<compile_context>
chip_gen: v7x
topology: tpu7x:2x2x1
jax: 0.10.0
libtpu: 0.0.40
codegen_flags: <defaults>
</compile_context>

<pallas_src>
import math

import jax
import jax.numpy as jnp
from jax.experimental import pallas as pl
from jax.experimental.pallas import tpu as pltpu


def _sincos_emb_kernel(x_ref, w_ref, p_ref, out_ref):
    # x_ref:   [1, TB]   batch on lanes (lane-dense)
    # w_ref:   [2H, 1]   2*pi*w duplicated: rows 0..H-1 and H..2H-1 identical
    # p_ref:   [2H, 1]   phase: 0 for sin rows, pi/2 for cos rows
    # out_ref: [2H, TB]  rows 0..H-1 = sin(2*pi*w*x), rows H..2H-1 = cos(...)
    x = x_ref[...].astype(jnp.float32)   # [1, TB]  sublane-broadcasts
    w = w_ref[...].astype(jnp.float32)   # [2H, 1]  lane-broadcasts
    p = p_ref[...].astype(jnp.float32)   # [2H, 1]
    # Single EUP pass (cos(t) == sin(t + pi/2)); one dense, unmasked store.
    out_ref[...] = jnp.sin(w * x + p).astype(out_ref.dtype)


def _pick_batch_tile(B: int) -> int:
    """Lane tile over the batch.

    - Small B: one full-extent block (splitting only adds per-step overhead).
    - Larger B: a multiple of 128 (lane width), capped at 8192 (per-iter VMEM
      is tiny vs 64/128 MiB), and <= ~B/2 so the grid has >= 2 iterations and
      the 'parallel' grid axis can shard across v7x's two TensorCores.
    Ragged last blocks are allowed (cdiv grid + masked writeback).
    """
    if B <= 256:
        return B
    tb = pl.cdiv(pl.cdiv(B, 2), 128) * 128
    return min(tb, 8192)


def sincos_features(x, weights):
    """Lane-dense slab [2*half_dim, B]: rows [0:H) = sin(2*pi*w*x), [H:2H) = cos."""
    assert x.ndim == 2 and x.shape[1] == 1, "x must be [B, 1]"
    B = x.shape[0]
    half_dim = weights.shape[0]
    two_h = 2 * half_dim

    # One-time constant prep on the parameter (weights are constant):
    # 2*pi folded in, duplicated for the sin/cos halves, plus the phase column.
    w2pi = weights.astype(jnp.float32) * (2.0 * math.pi)
    w_col = jnp.concatenate([w2pi, w2pi]).reshape(two_h, 1)
    p_col = jnp.concatenate(
        [jnp.zeros((half_dim,), jnp.float32),
         jnp.full((half_dim,), 0.5 * math.pi, jnp.float32)]
    ).reshape(two_h, 1)

    x_row = x.reshape(1, B)        # [B,1] -> [1,B]: free reshape, lane-dense DMA

    TB = _pick_batch_tile(B)
    grid = (pl.cdiv(B, TB),)

    n_out = B * two_h
    cost = pl.CostEstimate(
        flops=2 * n_out,               # one mul + one add per output element
        transcendentals=n_out,         # one sin per output element
        bytes_accessed=4 * (B + 2 * two_h + n_out),
    )

    return pl.pallas_call(
        _sincos_emb_kernel,
        out_shape=jax.ShapeDtypeStruct((two_h, B), x.dtype),
        grid=grid,
        in_specs=[
            pl.BlockSpec((1, TB), lambda i: (0, i)),
            pl.BlockSpec((two_h, 1), lambda i: (0, 0)),
            pl.BlockSpec((two_h, 1), lambda i: (0, 0)),
        ],
        out_specs=pl.BlockSpec((two_h, TB), lambda i: (0, i)),
        compiler_params=pltpu.CompilerParams(
            dimension_semantics=("parallel",),   # shards the batch grid on v7x's 2 TCs
        ),
        cost_estimate=cost,
    )(x_row, w_col, p_col)


def random_or_learned_sinusoidal_pos_emb(x, weights):
    """PyTorch-order output [B, 2*half_dim + 1]: columns [x, sin(2πwx), cos(2πwx)]."""
    slab = sincos_features(x, weights)                     # [2H, B], lane-dense
    # TODO(synk): consumers should take (x, slab) and fuse the transpose/concat
    # into the first time-MLP matmul instead of this wrapper HBM round-trip.
    return jnp.concatenate([x, slab.T.astype(x.dtype)], axis=-1)


def reference(x, weights):
    freqs = x * weights[None, :] * 2.0 * math.pi
    return jnp.concatenate([x, jnp.sin(freqs), jnp.cos(freqs)], axis=-1)


if __name__ == "__main__":
    key = jax.random.PRNGKey(0)
    kx, kw = jax.random.split(key)

    dim = 32                      # must be even; half_dim = 16
    half_dim = dim // 2
    weights = jax.random.normal(kw, (half_dim,), dtype=jnp.float32)

    # Small-shape demo (single full-extent block).
    B = 8
    x = jax.random.uniform(kx, (B, 1), dtype=jnp.float32)
    out = random_or_learned_sinusoidal_pos_emb(x, weights)
    out = jax.block_until_ready(out)
    ref = reference(x, weights)
    assert out.shape == (B, dim + 1), out.shape
    assert jnp.allclose(out, ref, atol=1e-5, rtol=1e-5), "mismatch vs reference (B=8)"

    # Ragged cdiv-grid path (B not a multiple of the lane tile): masked writeback.
    B2 = 300
    x2 = jax.random.uniform(kx, (B2, 1), dtype=jnp.float32)
    out2 = jax.block_until_ready(random_or_learned_sinusoidal_pos_emb(x2, weights))
    ref2 = reference(x2, weights)
    assert out2.shape == (B2, dim + 1), out2.shape
    assert jnp.allclose(out2, ref2, atol=1e-5, rtol=1e-5), "mismatch vs reference (B=300)"

    print("KERNEL_OK")
</pallas_src>

<mosaic_0001>
module attributes {stable_mosaic.version = 11 : i64} {
  func.func @_sincos_emb_kernel(%arg0: i32, %arg1: memref<1x8xf32, #tpu.memory_space<vmem>>, %arg2: memref<32x1xf32, #tpu.memory_space<vmem>>, %arg3: memref<32x1xf32, #tpu.memory_space<vmem>>, %arg4: memref<32x8xf32, #tpu.memory_space<vmem>>) attributes {dimension_semantics = [#tpu.dimension_semantics<parallel>], iteration_bounds = array<i64: 1>, scalar_prefetch = 0 : i64, scratch_operands = 0 : i64, tpu.core_type = #tpu.core_type<tc>, window_params = [{transform_indices = @transform_0, window_bounds = array<i64: 1, 8>}, {pipeline_mode = #tpu.pipeline_mode<synchronous>, transform_indices = @transform_1, window_bounds = array<i64: 32, 1>}, {pipeline_mode = #tpu.pipeline_mode<synchronous>, transform_indices = @transform_2, window_bounds = array<i64: 32, 1>}, {transform_indices = @transform_3, window_bounds = array<i64: 32, 8>}]} {
    %c0 = arith.constant 0 : index
    %c0_0 = arith.constant 0 : index
    %0 = vector.load %arg1[%c0, %c0_0] : memref<1x8xf32, #tpu.memory_space<vmem>>, vector<1x8xf32>
    %c0_1 = arith.constant 0 : index
    %c0_2 = arith.constant 0 : index
    %1 = vector.load %arg2[%c0_1, %c0_2] : memref<32x1xf32, #tpu.memory_space<vmem>>, vector<32x1xf32>
    %c0_3 = arith.constant 0 : index
    %c0_4 = arith.constant 0 : index
    %2 = vector.load %arg3[%c0_3, %c0_4] : memref<32x1xf32, #tpu.memory_space<vmem>>, vector<32x1xf32>
    %3 = vector.broadcast %1 : vector<32x1xf32> to vector<32x8xf32>
    %4 = vector.broadcast %0 : vector<1x8xf32> to vector<32x8xf32>
    %5 = arith.mulf %3, %4 : vector<32x8xf32>
    %6 = vector.broadcast %2 : vector<32x1xf32> to vector<32x8xf32>
    %7 = arith.addf %5, %6 : vector<32x8xf32>
    %8 = math.sin %7 : vector<32x8xf32>
    %c0_5 = arith.constant 0 : index
    %c0_6 = arith.constant 0 : index
    %9 = vector.load %arg4[%c0_5, %c0_6] : memref<32x8xf32, #tpu.memory_space<vmem>>, vector<32x8xf32>
    tpu.vector_store %arg4[%c0_5, %c0_6], %8 {strides = array<i32>} : memref<32x8xf32, #tpu.memory_space<vmem>>, vector<32x8xf32>,
    return
  }
  func.func @transform_0(%arg0: i32) -> (i32, i32) {
    %c0_i32 = arith.constant 0 : i32
    %c0_i32_0 = arith.constant 0 : i32
    return %c0_i32, %arg0 : i32, i32
  }
  func.func @transform_1(%arg0: i32) -> (i32, i32) {
    %c0_i32 = arith.constant 0 : i32
    %c0_i32_0 = arith.constant 0 : i32
    %c0_i32_1 = arith.constant 0 : i32
    return %c0_i32, %c0_i32_0 : i32, i32
  }
  func.func @transform_2(%arg0: i32) -> (i32, i32) {
    %c0_i32 = arith.constant 0 : i32
    %c0_i32_0 = arith.constant 0 : i32
    %c0_i32_1 = arith.constant 0 : i32
    return %c0_i32, %c0_i32_0 : i32, i32
  }
  func.func @transform_3(%arg0: i32) -> (i32, i32) {
    %c0_i32 = arith.constant 0 : i32
    %c0_i32_0 = arith.constant 0 : i32
    return %c0_i32, %arg0 : i32, i32
  }
}

</mosaic_0001>

<bundles_post_ra>
// kernel: tpu_custom_call.1
= control target key start
LH: loop header
LB: loop body
LE: loop exit
PB: predicated region body
PF: predicated region fallthrough
CT: control target
= control target key end

     0   :  { %v560_v0 = vmov 0   ;;  %v561_v50 = vmov 683565275   ;;  %v562_v54 = vmov 2475754826   ;;  %s913_s1 = inlined_call_operand.vmem [shape: f32[32,1], index: 1, kind: input, shape index: {}]   ;;  %s914_s2 = inlined_call_operand.vmem [shape: f32[32,1], index: 2, kind: input, shape index: {}]   ;;  %s915_s0 = inlined_call_operand.vmem [shape: f32[1,8], index: 0, kind: input, shape index: {}]   ;;  %s916_s3 = inlined_call_operand.vmem [shape: f32[32,8], index: 3, kind: output, shape index: {}]  }
   0x1   :  { %543 = vset.pattern.permute.xlu1 %v560_v0  ;;  %542 = vset.pattern.permute.xlu0 %v560_v0  ;;  %v17_v1 = vld [vmem:[%s913_s1 + $0x10] sm:$0xff]  ;;  %v15_v2 = vld [vmem:[%s913_s1] sm:$0xff]  ;;  %v18_v3 = vld [vmem:[%s913_s1 + $0x18] sm:$0xff]  ;;  %v563_v56 = vmov 2131351028  }
   0x2   :  { %35 = vperm.xlu1 %543, %v17_v1   ;;  %25 = vperm.xlu0 %542, %v15_v2   ;;  %v16_v4 = vld [vmem:[%s913_s1 + $0x8] sm:$0xff]  ;;  %v19_v6 = vld [vmem:[%s914_s2] sm:$0xff]  ;;  %v22_v7 = vld [vmem:[%s914_s2 + $0x18] sm:$0xff]  ;;  %v564_v58 = vmov 2102212464  }
   0x3   :  { %v20_v5 = vld [vmem:[%s914_s2 + $0x8] sm:$0xff]  ;;  %v21_v8 = vld [vmem:[%s914_s2 + $0x10] sm:$0xff]  ;;  %v502_v11 = vld [vmem:[%s915_s0] ss:$0 sm:$0xff]  ;;  %v565_v60 = vmov 920167782  }
   0x6   :  { %40 = vperm.xlu1 %543, %v18_v3   ;;  %30 = vperm.xlu0 %542, %v16_v4   ;;  %v566_v3 = vmov 1326507024  }
   0xa   :  { %60 = vperm.xlu1 %543, %v20_v5   ;;  %55 = vperm.xlu0 %542, %v19_v6  }
   0xe   :  { %70 = vperm.xlu1 %543, %v22_v7   ;;  %65 = vperm.xlu0 %542, %v21_v8  }
  0x81   :  { %v36_v9 = vpop.permute.xlu1 %35  ;;  %v26_v10 = vpop.permute.xlu0 %25 }
  0x82   :  { %v49_v14 = vmul.f32 %v502_v11, %v26_v10  ;;  %v629_v41 = vmul.f32 %v502_v11, %v36_v9 }
  0x85   :  { %v41_v12 = vpop.permute.xlu1 %40  ;;  %v31_v13 = vpop.permute.xlu0 %30 }
  0x86   :  { %v50_v15 = vmul.f32 %v502_v11, %v31_v13  ;;  %v52_v20 = vmul.f32 %v502_v11, %v41_v12 }
  0x89   :  { %v61_v16 = vpop.permute.xlu1 %60  ;;  %v56_v17 = vpop.permute.xlu0 %55 }
  0x8a   :  { %v614_v18 = vadd.f32 %v61_v16, %v50_v15  ;;  %v616_v19 = vadd.f32 %v56_v17, %v49_v14 }
  0x8c   :  { %v181_v21 = vand.u32 2147483647, %v614_v18  ;;  %v184_v22 = vand.u32 2139095040, %v614_v18  ;;  %v77_v23 = vand.u32 2147483647, %v616_v19  ;;  %v80_v24 = vand.u32 2139095040, %v616_v19 }
  0x8d   :  { %v71_v25 = vpop.permute.xlu1 %70  ;;  %vm183_vm13 = vcmp.lt.s32.totalorder %v614_v18, 0 }
  0x8e   :  { %v185_v26 = vshrl.u32 %v184_v22, 23  ;;  %v622_v27 = vadd.f32 %v71_v25, %v52_v20  ;;  %v188_v28 = vand.u32 8388607, %v181_v21  ;;  %v81_v29 = vshrl.u32 %v80_v24, 23 }
  0x8f   :  { %v84_v30 = vand.u32 8388607, %v77_v23  ;;  %vm742_vm15 = vcmp.le.f32.partialorder %v181_v21, 0.7853982 }
  0x90   :  { %v507_v31 = vadd.s32 4294967169, %v185_v26  ;;  %v503_v32 = vadd.s32 4294967169, %v81_v29  ;;  %v392_v33 = vand.u32 2139095040, %v622_v27  ;;  %v189_v35 = vor.u32 8388608, %v188_v28 }
  0x91   :  { %v85_v36 = vor.u32 8388608, %v84_v30  ;;  %v389_v48 = vand.u32 2147483647, %v622_v27 }
  0x92   :  { %v191_v34 = vadd.s32 1, %v507_v31  ;;  %v87_v37 = vadd.s32 1, %v503_v32  ;;  %v393_v38 = vshrl.u32 %v392_v33, 23  ;;  %v631_v45 = vshll.u32 %v189_v35, 8 }
  0x93   :  { %v635_v47 = vshll.u32 %v85_v36, 8 }
  0x94   :  { %vm192_vm0 = vcmp.gt.s32.totalorder %v191_v34, 0  ;;  %vm88_vm1 = vcmp.gt.s32.totalorder %v87_v37, 0  ;;  %v515_v40 = vadd.s32 4294967169, %v393_v38 }
  0x95   :  { %v193_v39 = vsel %vm192_vm0, %v191_v34, 0  ;;  %v89_v44 = vsel %vm88_vm1, %v87_v37, 0 }
  0x96   :  { %v194_v42 = vshrl.u32 %v193_v39, 5  ;;  %v195_v43 = vand.u32 31, %v193_v39  ;;  %v633_v46 = vshrl.u32 %v89_v44, 5  ;;  %v91_v52 = vand.u32 31, %v89_v44 }
  0x97   :  { %v639_v53 = vadd.s32 1, %v515_v40 }
  0x98   :  { %v196_v49 = vsub.s32 32, %v195_v43  ;;  %v198_v51 = vshll.u32 %v561_v50, %v195_v43  ;;  %v201_v55 = vshll.u32 %v562_v54, %v195_v43  ;;  %v204_v57 = vshll.u32 %v563_v56, %v195_v43 }
  0x99   :  { %v207_v59 = vshll.u32 %v564_v58, %v195_v43  ;;  %v210_v61 = vshll.u32 %v565_v60, %v195_v43  ;;  %vm213_vm2 = vcmp.lt.s32.totalorder %v194_v42, 1  ;;  %vm214_vm3 = vcmp.lt.s32.totalorder %v194_v42, 2 }
  0x9a   :  { %v199_v62 = vshrl.u32 %v562_v54, %v196_v49  ;;  %v202_v63 = vshrl.u32 %v563_v56, %v196_v49  ;;  %v205_v0 = vshrl.u32 %v564_v58, %v196_v49  ;;  %v197_v1 = vshrl.u32 %v561_v50, %v196_v49 }
  0x9b   :  { %v208_v2 = vshrl.u32 %v565_v60, %v196_v49  ;;  %v211_v4 = vshrl.u32 %v566_v3, %v196_v49  ;;  %v92_v8 = vsub.s32 32, %v91_v52  ;;  %vm215_vm4 = vcmp.lt.s32.totalorder %v194_v42, 3 }
  0x9c   :  { %v200_v5 = vor.u32 %v199_v62, %v198_v51  ;;  %v203_v6 = vor.u32 %v202_v63, %v201_v55  ;;  %v206_v7 = vor.u32 %v205_v0, %v204_v57  ;;  %vm216_vm5 = vcmp.lt.s32.totalorder %v194_v42, 4 }
  0x9d   :  { %v209_v9 = vor.u32 %v208_v2, %v207_v59  ;;  %v212_v10 = vor.u32 %v211_v4, %v210_v61  ;;  %v94_v20 = vshll.u32 %v561_v50, %v91_v52  ;;  %v95_v25 = vshrl.u32 %v562_v54, %v92_v8 }
  0x9e   :  { %v217_v11 = vsel %vm213_vm2, %v197_v1, %v200_v5  ;;  %v218_v12 = vsel %vm216_vm5, %v206_v7, 2102212464  ;;  %v221_v13 = vsel %vm213_vm2, %v200_v5, %v203_v6  ;;  %v225_v14 = vsel %vm213_vm2, %v203_v6, %v206_v7 }
  0x9f   :  { %v219_v15 = vsel %vm215_vm4, %v203_v6, %v218_v12  ;;  %v222_v16 = vsel %vm216_vm5, %v209_v9, 920167782  ;;  %v226_v17 = vsel %vm216_vm5, %v212_v10, 1326507024  ;;  %v97_v26 = vshll.u32 %v562_v54, %v91_v52 }
  0xa0   :  { %v223_v22 = vsel %vm215_vm4, %v206_v7, %v222_v16  ;;  %v227_v24 = vsel %vm215_vm4, %v209_v9, %v226_v17  ;;  %v220_v28 = vsel %vm214_vm3, %v217_v11, %v219_v15  ;;  %v98_v31 = vshrl.u32 %v563_v56, %v92_v8  ;;  %v66_v9 = vpop.permute.xlu0 %65 }
  0xa1   :  { %v224_v29 = vsel %vm214_vm3, %v221_v13, %v223_v22  ;;  %v228_v30 = vsel %vm214_vm3, %v225_v14, %v227_v24  ;;  %v96_v36 = vor.u32 %v95_v25, %v94_v20  ;;  %v100_v38 = vshll.u32 %v563_v56, %v91_v52 }
  0xa2   :  { %v662_v32 = vmul.u32.u64.low %v631_v45, %v228_v30  ;;  %v663_v33 = vmul.u32.u64.high %v631_v45, %v228_v30, %v662_v32  ;;  %v666_v34 = vmul.u32.u64.low %v631_v45, %v224_v29  ;;  %v667_v35 = vmul.u32.u64.high %v631_v45, %v224_v29, %v666_v34 }
  0xa3   :  { %v99_v37 = vor.u32 %v98_v31, %v97_v26  ;;  %v101_v39 = vshrl.u32 %v564_v58, %v92_v8  ;;  %v93_v40 = vshrl.u32 %v561_v50, %v92_v8  ;;  %v103_v42 = vshll.u32 %v564_v58, %v91_v52 }
  0xa4   :  { %v104_v43 = vshrl.u32 %v565_v60, %v92_v8  ;;  %v107_v44 = vshrl.u32 %v566_v3, %v92_v8  ;;  %v236_v49 = vmul.u32 %v631_v45, %v220_v28  ;;  %v106_v55 = vshll.u32 %v565_v60, %v91_v52 }
  0xa5   :  { %v102_v51 = vor.u32 %v101_v39, %v100_v38  ;;  %vm109_vm6 = vcmp.lt.s32.totalorder %v633_v46, 1  ;;  %vm238_vm7 = vc.u32 %v663_v33, %v666_v34  ;;  %v239_v57 = vadd.s32 1, %v667_v35 }
  0xa6   :  { %v105_v59 = vor.u32 %v104_v43, %v103_v42  ;;  %vm110_vm8 = vcmp.lt.s32.totalorder %v633_v46, 2  ;;  %v108_v61 = vor.u32 %v107_v44, %v106_v55  ;;  %vm111_vm9 = vcmp.lt.s32.totalorder %v633_v46, 3 }
  0xa7   :  { %vm112_vm10 = vcmp.lt.s32.totalorder %v633_v46, 4  ;;  %v117_v62 = vsel %vm109_vm6, %v96_v36, %v99_v37  ;;  %v240_v45 = vsel %vm238_vm7, %v239_v57, %v667_v35  ;;  %v121_v0 = vsel %vm109_vm6, %v99_v37, %v102_v51 }
  0xa8   :  { %v114_v63 = vsel %vm112_vm10, %v102_v51, 2102212464  ;;  %v118_v52 = vsel %vm112_vm10, %v105_v59, 920167782  ;;  %v241_v1 = vadd.s32 %v240_v45, %v236_v49  ;;  %v113_v2 = vsel %vm109_vm6, %v93_v40, %v96_v36 }
  0xa9   :  { %v119_v4 = vsel %vm111_vm9, %v102_v51, %v118_v52  ;;  %v122_v5 = vsel %vm112_vm10, %v108_v61, 1326507024  ;;  %v115_v6 = vsel %vm111_vm9, %v99_v37, %v114_v63  ;;  %vm400_vm11 = vcmp.gt.s32.totalorder %v639_v53, 0 }
  0xaa   :  { %v120_v7 = vsel %vm110_vm8, %v117_v62, %v119_v4  ;;  %v123_v8 = vsel %vm111_vm9, %v105_v59, %v122_v5  ;;  %v242_v10 = vadd.s32 536870912, %v241_v1  ;;  %v396_v16 = vand.u32 8388607, %v389_v48 }
  0xab   :  { %v124_v11 = vsel %vm110_vm8, %v121_v0, %v123_v8  ;;  %v692_v12 = vmul.u32.u64.low %v635_v47, %v120_v7  ;;  %v693_v13 = vmul.u32.u64.high %v635_v47, %v120_v7, %v692_v12  ;;  %v401_v17 = vsel %vm400_vm11, %v639_v53, 0 }
  0xac   :  { %v697_v14 = vmul.u32.u64.low %v635_v47, %v124_v11  ;;  %v698_v15 = vmul.u32.u64.high %v635_v47, %v124_v11, %v697_v14  ;;  %v703_v20 = vshrl.u32 %v242_v10, 30  ;;  %v116_v22 = vsel %vm110_vm8, %v113_v2, %v115_v6 }
  0xad   :  { %v403_v24 = vand.u32 31, %v401_v17  ;;  %v708_v25 = vadd.f32 %v66_v9, %v629_v41  ;;  %v135_v28 = vadd.s32 1, %v693_v13  ;;  %v132_v29 = vmul.u32 %v635_v47, %v116_v22 }
  0xae   :  { %v244_v26 = vshll.u32 %v703_v20, 30  ;;  %vm134_vm12 = vc.u32 %v698_v15, %v692_v12  ;;  %v397_v30 = vor.u32 8388608, %v396_v16  ;;  %v402_v51 = vshrl.u32 %v401_v17, 5 }
  0xaf   :  { %v404_v53 = vsub.s32 32, %v403_v24  ;;  %v136_v32 = vsel %vm134_vm12, %v135_v28, %v693_v13  ;;  %v288_v46 = vand.u32 2139095040, %v708_v25  ;;  %v285_v41 = vand.u32 2147483647, %v708_v25 }
  0xb0   :  { %v245_v31 = vsub.s32 %v241_v1, %v244_v26  ;;  %v137_v35 = vadd.s32 %v136_v32, %v132_v29  ;;  %v720_v47 = vshll.u32 %v397_v30, 8  ;;  %v406_v55 = vshll.u32 %v561_v50, %v403_v24 }
  0xb1   :  { %v407_v38 = vshrl.u32 %v562_v54, %v404_v53  ;;  %v410_v39 = vshrl.u32 %v563_v56, %v404_v53  ;;  %v413_v42 = vshrl.u32 %v564_v58, %v404_v53  ;;  %v416_v43 = vshrl.u32 %v565_v60, %v404_v53 }
  0xb2   :  { %v247_v36 = vsub.s32 0, %v245_v31  ;;  %v138_v37 = vadd.s32 536870912, %v137_v35  ;;  %v289_v44 = vshrl.u32 %v288_v46, 23  ;;  %v409_v57 = vshll.u32 %v562_v54, %v403_v24 }
  0xb3   :  { %v412_v61 = vshll.u32 %v563_v56, %v403_v24  ;;  %v415_v62 = vshll.u32 %v564_v58, %v403_v24  ;;  %v419_v45 = vshrl.u32 %v566_v3, %v404_v53  ;;  %v237_v63 = vadd.s32 %v666_v34, %v663_v33 }
  0xb4   :  { %v508_v40 = vmin.u32 %v247_v36, %v245_v31  ;;  %v724_v49 = vshrl.u32 %v138_v37, 30  ;;  %v408_v0 = vor.u32 %v407_v38, %v406_v55  ;;  %v411_v1 = vor.u32 %v410_v39, %v409_v57 }
  0xb5   :  { %v414_v4 = vor.u32 %v413_v42, %v412_v61  ;;  %v417_v5 = vor.u32 %v416_v43, %v415_v62  ;;  %v418_v6 = vshll.u32 %v565_v60, %v403_v24  ;;  %v267_v7 = vsub.s32 4, %v703_v20 }
  0xb6   :  { %v249_v59 = vclz %v508_v40  ;;  %v140_v52 = vshll.u32 %v724_v49, 30  ;;  %v405_v9 = vshrl.u32 %v561_v50, %v404_v53  ;;  %vm421_vm14 = vcmp.lt.s32.totalorder %v402_v51, 1 }
  0xb7   :  { %v420_v34 = vor.u32 %v419_v45, %v418_v6  ;;  %vm422_vm1 = vcmp.lt.s32.totalorder %v402_v51, 2  ;;  %vm423_vm2 = vcmp.lt.s32.totalorder %v402_v51, 3  ;;  %vm424_vm3 = vcmp.lt.s32.totalorder %v402_v51, 4 }
  0xb8   :  { %v509_v2 = vadd.s32 4294967294, %v249_v59  ;;  %v737_v8 = vsub.s32 %v137_v35, %v140_v52  ;;  %v429_v13 = vsel %vm421_vm14, %v408_v0, %v411_v1  ;;  %v426_v17 = vsel %vm424_vm3, %v414_v4, 2102212464 }
  0xb9   :  { %v430_v22 = vsel %vm424_vm3, %v417_v5, 920167782  ;;  %v433_v28 = vsel %vm421_vm14, %v411_v1, %v414_v4  ;;  %v434_v32 = vsel %vm424_vm3, %v420_v34, 1326507024  ;;  %vm79_vm4 = vcmp.lt.s32.totalorder %v616_v19, 0 }
  0xba   :  { %vm510_vm0 = vcmp.lt.s32.totalorder %v509_v2, 0  ;;  %v143_v11 = vsub.s32 0, %v737_v8  ;;  %v431_v26 = vsel %vm423_vm2, %v414_v4, %v430_v22  ;;  %v425_v35 = vsel %vm421_vm14, %v405_v9, %v408_v0 }
  0xbb   :  { %v252_v10 = vsel %vm510_vm0, 0, %v509_v2  ;;  %v432_v53 = vsel %vm422_vm1, %v429_v13, %v431_v26  ;;  %v427_v36 = vsel %vm423_vm2, %v411_v1, %v426_v17  ;;  %v511_v37 = vadd.s32 4294967169, %v289_v44 }
  0xbc   :  { %v253_v14 = vsub.s32 32, %v252_v10  ;;  %v257_v16 = vsub.s32 4294967266, %v252_v10  ;;  %v254_v24 = vshll.u32 %v245_v31, %v252_v10  ;;  %v504_v21 = vmin.u32 %v143_v11, %v737_v8 }
  0xbd   :  { %v268_v39 = vsel %vm183_vm13, %v267_v7, %v703_v20  ;;  %v435_v40 = vsel %vm423_vm2, %v417_v5, %v434_v32  ;;  %v761_v55 = vmul.u32.u64.low %v720_v47, %v432_v53  ;;  %v762_v57 = vmul.u32.u64.high %v720_v47, %v432_v53, %v761_v55 }
  0xbe   :  { %v255_v29 = vshrl.u32 %v237_v63, %v253_v14  ;;  %v258_v30 = vadd.s32 127, %v257_v16  ;;  %v145_v46 = vclz %v504_v21  ;;  %v436_v43 = vsel %vm422_vm1, %v433_v28, %v435_v40 }
  0xbf   :  { %v428_v61 = vsel %vm422_vm1, %v425_v35, %v427_v36  ;;  %v767_v44 = vmul.u32.u64.low %v720_v47, %v436_v43  ;;  %v768_v62 = vmul.u32.u64.high %v720_v47, %v436_v43, %v767_v44  ;;  %v270_v20 = vsel %vm742_vm15, 0, %v268_v39 }
  0xc0   :  { %v256_v31 = vor.u32 %v255_v29, %v254_v24  ;;  %v259_v38 = vshll.u32 %v258_v30, 23  ;;  %v505_v42 = vadd.s32 4294967294, %v145_v46  ;;  %v133_v45 = vadd.s32 %v692_v12, %v698_v15 }
  0xc1   :  { %v295_v63 = vadd.s32 1, %v511_v37  ;;  %v163_v2 = vsub.s32 4, %v724_v49  ;;  %v444_v5 = vmul.u32 %v720_v47, %v428_v61  ;;  %v447_v6 = vadd.s32 1, %v762_v57 }
  0xc2   :  { %v260_v59 = vor.u32 4788187, %v259_v38  ;;  %vm506_vm5 = vcmp.lt.s32.totalorder %v505_v42, 0  ;;  %v263_v0 = vcvt.s32.f32 %v256_v31  ;;  %vm446_vm6 = vc.u32 %v768_v62, %v761_v55 }
  0xc3   :  { %v148_v1 = vsel %vm506_vm5, 0, %v505_v42  ;;  %vm296_vm7 = vcmp.gt.s32.totalorder %v295_v63, 0  ;;  %v448_v34 = vsel %vm446_vm6, %v447_v6, %v762_v57  ;;  %v164_v13 = vsel %vm79_vm4, %v163_v2, %v724_v49 }
  0xc4   :  { %v261_v52 = vand.u32 2147483647, %v260_v59  ;;  %v149_v4 = vsub.s32 32, %v148_v1  ;;  %v153_v51 = vsub.s32 4294967266, %v148_v1  ;;  %v150_v9 = vshll.u32 %v737_v8, %v148_v1 }
  0xc5   :  { %v297_v10 = vsel %vm296_vm7, %v295_v63, 0  ;;  %v449_v47 = vadd.s32 %v448_v34, %v444_v5  ;;  %v274_v16 = vadd.s32 3, %v270_v20  ;;  %vm788_vm8 = vcmp.le.f32.partialorder %v77_v23, 0.7853982 }
  0xc6   :  { %v264_v7 = vmul.f32 %v263_v0, %v261_v52  ;;  %v151_v12 = vshrl.u32 %v133_v45, %v149_v4  ;;  %v154_v15 = vadd.s32 127, %v153_v51  ;;  %v299_v14 = vand.u32 31, %v297_v10 }
  0xc7   :  { %v450_v21 = vadd.s32 536870912, %v449_v47  ;;  %v166_v29 = vsel %vm788_vm8, 0, %v164_v13  ;;  %v292_v53 = vand.u32 8388607, %v285_v41  ;;  %v801_v23 = vand.u32 3, %v274_v16 }
  0xc8   :  { %v265_v11 = vxor.u32 2147483648, %v264_v7  ;;  %v152_v17 = vor.u32 %v151_v12, %v150_v9  ;;  %v155_v22 = vshll.u32 %v154_v15, 23  ;;  %v300_v26 = vsub.s32 32, %v299_v14 }
  0xc9   :  { %v797_v30 = vshrl.u32 %v450_v21, 30  ;;  %v170_v35 = vadd.s32 3, %v166_v29  ;;  %v311_v39 = vshll.u32 %v564_v58, %v299_v14  ;;  %v811_v43 = vshrl.u32 %v297_v10, 5 }
  0xca   :  { %v266_v8 = vsel %vm183_vm13, %v265_v11, %v264_v7  ;;  %v156_v28 = vor.u32 4788187, %v155_v22  ;;  %v159_v46 = vcvt.s32.f32 %v152_v17  ;;  %v303_v33 = vshrl.u32 %v562_v54, %v300_v26 }
  0xcb   :  { %v269_v49 = vsel %vm742_vm15, %v614_v18, %v266_v8  ;;  %v452_v36 = vshll.u32 %v797_v30, 30  ;;  %v306_v37 = vshrl.u32 %v563_v56, %v300_v26  ;;  %v309_v38 = vshrl.u32 %v564_v58, %v300_v26 }
  0xcc   :  { %544 = vcosq.f32 %v269_v49  ;;  %v157_v32 = vand.u32 2147483647, %v156_v28  ;;  %v312_v40 = vshrl.u32 %v565_v60, %v300_v26  ;;  %v302_v57 = vshll.u32 %v561_v50, %v299_v14 }
  0xcd   :  { %546 = vsinq.f32 %v269_v49  ;;  %v809_v42 = vsub.s32 %v449_v47, %v452_v36  ;;  %v305_v59 = vshll.u32 %v562_v54, %v299_v14  ;;  %vm277_vm9 = vcmp.eq.s32.totalorder %v801_v23, 0 }
  0xce   :  { %v160_v31 = vmul.f32 %v159_v46, %v157_v32  ;;  %v308_v44 = vshll.u32 %v563_v56, %v299_v14  ;;  %v313_v20 = vor.u32 %v312_v40, %v311_v39  ;;  %v315_v45 = vshrl.u32 %v566_v3, %v300_v26 }
  0xcf   :  { %vm493_vm10 = vcmask 64512   ;;  %vm276_vm11 = vcmp.lt.s32.totalorder %v801_v23, 2  ;;  %vm280_vm12 = vcmp.eq.s32.totalorder %v801_v23, 2  ;;  %v455_v58 = vsub.s32 0, %v809_v42 }
  0xd0   :  { %v161_v61 = vxor.u32 2147483648, %v160_v31  ;;  %v293_v63 = vor.u32 8388608, %v292_v53  ;;  %v304_v52 = vor.u32 %v303_v33, %v302_v57  ;;  %vm273_vm13 = vweird.f32 %v614_v18 }
  0xd1   :  { %v307_v0 = vor.u32 %v306_v37, %v305_v59  ;;  %v310_v1 = vor.u32 %v309_v38, %v308_v44  ;;  %v314_v56 = vshll.u32 %v565_v60, %v299_v14  ;;  %v828_v2 = vand.u32 3, %v170_v35 }
  0xd2   :  { %v162_v54 = vsel %vm79_vm4, %v161_v61, %v160_v31  ;;  %v516_v4 = vmin.u32 %v455_v58, %v809_v42  ;;  %vm320_vm14 = vcmp.lt.s32.totalorder %v811_v43, 4  ;;  %v445_v51 = vadd.s32 %v761_v55, %v768_v62 }
  0xd3   :  { %v165_v3 = vsel %vm788_vm8, %v616_v19, %v162_v54  ;;  %v316_v5 = vor.u32 %v315_v45, %v314_v56  ;;  %v326_v6 = vsel %vm320_vm14, %v313_v20, 920167782  ;;  %vm317_vm15 = vcmp.lt.s32.totalorder %v811_v43, 1 }
  0xd4   :  { %548 = vcosq.f32 %v165_v3  ;;  %v457_v60 = vclz %v516_v4  ;;  %vm319_vm0 = vcmp.lt.s32.totalorder %v811_v43, 3  ;;  %v325_v15 = vsel %vm317_vm15, %v304_v52, %v307_v0 }
  0xd5   :  { %550 = vsinq.f32 %v165_v3  ;;  %v327_v34 = vsel %vm319_vm0, %v310_v1, %v326_v6  ;;  %v333_v55 = vshll.u32 %v293_v63, 8  ;;  %v301_v11 = vshrl.u32 %v561_v50, %v300_v26 }
  0xd6   :  { %v545_v7 = vpop.eup %544  ;;  %v517_v10 = vadd.s32 4294967294, %v457_v60  ;;  %vm318_vm1 = vcmp.lt.s32.totalorder %v811_v43, 2  ;;  %v322_v47 = vsel %vm320_vm14, %v310_v1, 2102212464  ;;  %v329_v14 = vsel %vm317_vm15, %v307_v0, %v310_v1 }
  0xd7   :  { %v547_v9 = vpop.eup %546  ;;  %v281_v12 = vxor.u32 2147483648, %v545_v7  ;;  %v330_v16 = vsel %vm320_vm14, %v316_v5, 1326507024  ;;  %v328_v50 = vsel %vm318_vm1, %v325_v15, %v327_v34  ;;  %v321_v21 = vsel %vm317_vm15, %v301_v11, %v304_v52 }
  0xd8   :  { %v278_v62 = vxor.u32 2147483648, %v547_v9  ;;  %vm518_vm2 = vcmp.lt.s32.totalorder %v517_v10, 0  ;;  %v331_v22 = vsel %vm319_vm0, %v313_v20, %v330_v16  ;;  %v323_v53 = vsel %vm319_vm0, %v307_v0, %v322_v47 }
  0xd9   :  { %v282_v13 = vsel %vm280_vm12, %v281_v12, %v547_v9  ;;  %v460_v24 = vsel %vm518_vm2, 0, %v517_v10  ;;  %v332_v26 = vsel %vm318_vm1, %v329_v14, %v331_v22  ;;  %v324_v31 = vsel %vm318_vm1, %v321_v21, %v323_v53 }
  0xda   :  { %v279_v17 = vsel %vm277_vm9, %v545_v7, %v278_v62  ;;  %v461_v28 = vsub.s32 32, %v460_v24  ;;  %v465_v29 = vsub.s32 4294967266, %v460_v24  ;;  %v462_v36 = vshll.u32 %v809_v42, %v460_v24 }
  0xdb   :  { %v283_v8 = vsel %vm276_vm11, %v279_v17, %v282_v13  ;;  %v872_v23 = vmul.u32.u64.low %v333_v55, %v332_v26  ;;  %v873_v32 = vmul.u32.u64.high %v333_v55, %v332_v26, %v872_v23  ;;  %vm176_vm3 = vcmp.eq.s32.totalorder %v828_v2, 2 }
  0xdc   :  { %v284_v49 = vsel %vm273_vm13, nan, %v283_v8  ;;  %v875_v46 = vmul.u32.u64.low %v333_v55, %v328_v50  ;;  %v876_v35 = vmul.u32.u64.high %v333_v55, %v328_v50, %v875_v46  ;;  %v463_v18 = vshrl.u32 %v445_v51, %v461_v28 }
  0xdd   :  { %495 = vst.msk [vmem:[%s916_s3 + $0x8] sm:$0xff] %vm493_vm10, %v284_v49  ;;  %v466_v33 = vadd.s32 127, %v465_v29  ;;  %vm173_vm5 = vcmp.eq.s32.totalorder %v828_v2, 0  ;;  %v340_v20 = vmul.u32 %v333_v55, %v324_v31  ;;  %vm169_vm6 = vweird.f32 %v616_v19 }
  0xde   :  { %v549_v37 = vpop.eup %548  ;;  %v464_v40 = vor.u32 %v463_v18, %v462_v36  ;;  %vm342_vm4 = vc.u32 %v873_v32, %v875_v46  ;;  %v343_v61 = vadd.s32 1, %v876_v35  ;;  %vm172_vm7 = vcmp.lt.s32.totalorder %v828_v2, 2 }
  0xdf   :  { %v551_v38 = vpop.eup %550  ;;  %v177_v39 = vxor.u32 2147483648, %v549_v37  ;;  %v467_v57 = vshll.u32 %v466_v33, 23  ;;  %v475_v1 = vsub.s32 4, %v797_v30  ;;  %vm391_vm8 = vcmp.lt.s32.totalorder %v622_v27, 0 }
  0xe0   :  { %v174_v59 = vxor.u32 2147483648, %v551_v38  ;;  %v344_v45 = vsel %vm342_vm4, %v343_v61, %v876_v35  ;;  %v471_v52 = vcvt.s32.f32 %v464_v40  ;;  %vm390_vm9 = vcmp.le.f32.partialorder %v389_v48, 0.7853982 }
  0xe1   :  { %v178_v42 = vsel %vm176_vm3, %v177_v39, %v551_v38  ;;  %v468_v44 = vor.u32 4788187, %v467_v57  ;;  %v345_v54 = vadd.s32 %v344_v45, %v340_v20  ;;  %v476_v4 = vsel %vm391_vm8, %v475_v1, %v797_v30 }
  0xe2   :  { %v175_v43 = vsel %vm173_vm5, %v549_v37, %v174_v59  ;;  %v478_v7 = vsel %vm390_vm9, 0, %v476_v4  ;;  %v341_v47 = vadd.s32 %v875_v46, %v873_v32  ;;  %vm481_vm15 = vweird.f32 %v622_v27 }
  0xe3   :  { %v179_v58 = vsel %vm172_vm7, %v175_v43, %v178_v42  ;;  %v469_v63 = vand.u32 2147483647, %v468_v44  ;;  %v346_v3 = vadd.s32 536870912, %v345_v54  ;;  %v482_v12 = vadd.s32 3, %v478_v7 }
  0xe4   :  { %v180_v0 = vsel %vm169_vm6, nan, %v179_v58  ;;  %vm287_vm0 = vcmp.lt.s32.totalorder %v708_v25, 0  ;;  %vm286_vm1 = vcmp.le.f32.partialorder %v285_v41, 0.7853982  ;;  %vm377_vm5 = vweird.f32 %v708_v25 }
  0xe5   :  { %494 = vst.msk [vmem:[%s916_s3] sm:$0xff] %vm493_vm10, %v180_v0  ;;  %v472_v56 = vmul.f32 %v471_v52, %v469_v63  ;;  %v347_v2 = vshrl.u32 %v346_v3, 30  ;;  %v483_v55 = vand.u32 3, %v482_v12 }
  0xe7   :  { %v473_v19 = vxor.u32 2147483648, %v472_v56  ;;  %v348_v5 = vshll.u32 %v347_v2, 30  ;;  %vm488_vm12 = vcmp.eq.s32.totalorder %v483_v55, 2  ;;  %vm484_vm13 = vcmp.lt.s32.totalorder %v483_v55, 2 }
  0xe8   :  { %vm485_vm14 = vcmp.eq.s32.totalorder %v483_v55, 0  ;;  %v371_v46 = vsub.s32 4, %v347_v2 }
  0xe9   :  { %v474_v51 = vsel %vm391_vm8, %v473_v19, %v472_v56  ;;  %v349_v60 = vsub.s32 %v345_v54, %v348_v5 }
  0xea   :  { %v477_v6 = vsel %vm390_vm9, %v622_v27, %v474_v51  ;;  %v372_v36 = vsel %vm287_vm0, %v371_v46, %v347_v2 }
  0xeb   :  { %552 = vcosq.f32 %v477_v6  ;;  %v351_v9 = vsub.s32 0, %v349_v60  ;;  %v374_v33 = vsel %vm286_vm1, 0, %v372_v36 }
  0xec   :  { %554 = vsinq.f32 %v477_v6  ;;  %v378_v37 = vadd.s32 3, %v374_v33 }
  0xed   :  { %v512_v15 = vmin.u32 %v351_v9, %v349_v60 }
  0xee   :  { %v379_v31 = vand.u32 3, %v378_v37 }
  0xef   :  { %v353_v34 = vclz %v512_v15 }
  0xf0   :  { %vm384_vm2 = vcmp.eq.s32.totalorder %v379_v31, 2  ;;  %vm381_vm3 = vcmp.eq.s32.totalorder %v379_v31, 0  ;;  %vm380_vm4 = vcmp.lt.s32.totalorder %v379_v31, 2 }
  0xf1   :  { %v513_v62 = vadd.s32 4294967294, %v353_v34 }
  0xf3   :  { %vm514_vm11 = vcmp.lt.s32.totalorder %v513_v62, 0 }
  0xf4   :  { %v356_v48 = vsel %vm514_vm11, 0, %v513_v62 }
  0xf5   :  { %v553_v10 = vpop.eup %552  ;;  %v357_v14 = vsub.s32 32, %v356_v48  ;;  %v361_v16 = vsub.s32 4294967266, %v356_v48  ;;  %v358_v22 = vshll.u32 %v349_v60, %v356_v48 }
  0xf6   :  { %v555_v30 = vpop.eup %554  ;;  %v489_v11 = vxor.u32 2147483648, %v553_v10 }
  0xf7   :  { %v486_v13 = vxor.u32 2147483648, %v555_v30  ;;  %v359_v8 = vshrl.u32 %v341_v47, %v357_v14  ;;  %v362_v24 = vadd.s32 127, %v361_v16 }
  0xf8   :  { %v490_v17 = vsel %vm488_vm12, %v489_v11, %v555_v30 }
  0xf9   :  { %v487_v50 = vsel %vm485_vm14, %v553_v10, %v486_v13  ;;  %v360_v49 = vor.u32 %v359_v8, %v358_v22  ;;  %v363_v28 = vshll.u32 %v362_v24, 23 }
  0xfa   :  { %v491_v21 = vsel %vm484_vm13, %v487_v50, %v490_v17 }
  0xfb   :  { %v492_v26 = vsel %vm481_vm15, nan, %v491_v21  ;;  %v364_v29 = vor.u32 4788187, %v363_v28  ;;  %v367_v23 = vcvt.s32.f32 %v360_v49 }
  0xfc   :  { %497 = vst.msk [vmem:[%s916_s3 + $0x18] sm:$0xff] %vm493_vm10, %v492_v26 }
  0xfd   :  { %v365_v53 = vand.u32 2147483647, %v364_v29 }
  0xff   :  { %v368_v32 = vmul.f32 %v367_v23, %v365_v53 }
 0x101   :  { %v369_v35 = vxor.u32 2147483648, %v368_v32 }
 0x103   :  { %v370_v27 = vsel %vm287_vm0, %v369_v35, %v368_v32 }
 0x104   :  { %v373_v18 = vsel %vm286_vm1, %v708_v25, %v370_v27 }
 0x105   :  { %556 = vcosq.f32 %v373_v18 }
 0x106   :  { %558 = vsinq.f32 %v373_v18 }
 0x10f   :  { %v557_v38 = vpop.eup %556 }
 0x110   :  { %v559_v39 = vpop.eup %558  ;;  %v385_v40 = vxor.u32 2147483648, %v557_v38 }
 0x111   :  { %v382_v57 = vxor.u32 2147483648, %v559_v39 }
 0x112   :  { %v386_v59 = vsel %vm384_vm2, %v385_v40, %v559_v39 }
 0x113   :  { %v383_v61 = vsel %vm381_vm3, %v557_v38, %v382_v57 }
 0x114   :  { %v387_v41 = vsel %vm380_vm4, %v383_v61, %v386_v59 }
 0x115   :  { %v388_v42 = vsel %vm377_vm5, nan, %v387_v41 }
 0x116   :  { %496 = vst.msk [vmem:[%s916_s3 + $0x10] sm:$0xff] %vm493_vm10, %v388_v42 }

</bundles_post_ra>
